<compile_context>
chip_gen: v6e
topology: v6e:2x2x1
jax: 0.10.0
libtpu: 0.0.40
codegen_flags: <defaults>
</compile_context>

<pallas_src>
import jax
import jax.numpy as jnp
from jax.experimental import pallas as pl
from jax.experimental.pallas import tpu as pltpu

_EPS = 1e-5  # nn.LayerNorm default eps


def _my_layernorm_kernel(x_ref, gamma_ref, o_ref):
    # x_ref: (TB, L, C) slab covering TB full batch elements.
    x = x_ref[...].astype(jnp.float32)          # (TB, L, C)
    gamma = gamma_ref[...].astype(jnp.float32)  # (1, 1, C) -> broadcasts

    # --- LayerNorm statistics over the channel (last / lane) dimension ---
    mean = jnp.mean(x, axis=-1, keepdims=True)                   # (TB, L, 1)
    centered = x - mean
    var = jnp.mean(centered * centered, axis=-1, keepdims=True)  # biased var
    z = centered * jax.lax.rsqrt(var + _EPS)                     # (TB, L, C)

    # --- subtract mean over the sequence dimension (dim=1 in PyTorch) ---
    # beta cancels exactly in x_hat - mean_L(x_hat); gamma factors out.
    seq_mean = jnp.mean(z, axis=1, keepdims=True)                # (TB, 1, C)
    o_ref[...] = ((z - seq_mean) * gamma).astype(o_ref.dtype)


def _pick_batch_tile(B, L, C, itemsize, target_bytes=2 << 20):
    """Largest divisor of B whose (TB, L, C) slab is <= target_bytes,
    while keeping >= 2 grid steps when possible (v7x megacore)."""
    per_batch = max(1, L * C * itemsize)
    max_tb = max(1, target_bytes // per_batch)
    divisors = [d for d in range(1, B + 1) if B % d == 0]
    tb = max(d for d in divisors if d <= max_tb)
    if B // tb < 2:
        smaller = [d for d in divisors if B // d >= 2]
        if smaller:
            tb = max(smaller)
    return tb


def my_layernorm(x, gamma, beta):
    """x: (B, L, C); gamma, beta: (C,). Returns (B, L, C).

    `beta` is accepted for API parity with nn.LayerNorm but is mathematically
    redundant here (it cancels in x_hat - mean_L(x_hat)), so it is not DMA'd.
    """
    del beta  # cancels exactly; see kernel comment.
    B, L, C = x.shape
    itemsize = jnp.dtype(x.dtype).itemsize

    TB = _pick_batch_tile(B, L, C, itemsize)
    grid = (B // TB,)

    gamma3d = gamma.reshape(1, 1, C)

    # VMEM budget: double-buffered input + output blocks, plus f32
    # intermediates (x cast, z, reduction temporaries) with headroom.
    block_bytes = TB * L * C * itemsize
    f32_slab = TB * L * C * 4
    vmem_limit = int(
        min(max(2 * block_bytes * 2 + 4 * f32_slab + (2 << 20), 16 << 20),
            56 << 20)
    )

    return pl.pallas_call(
        _my_layernorm_kernel,
        out_shape=jax.ShapeDtypeStruct((B, L, C), x.dtype),
        grid_spec=pltpu.PrefetchScalarGridSpec(
            num_scalar_prefetch=0,
            grid=grid,
            in_specs=[
                pl.BlockSpec((TB, L, C), lambda b: (b, 0, 0)),
                pl.BlockSpec((1, 1, C), lambda b: (0, 0, 0)),
            ],
            out_specs=pl.BlockSpec((TB, L, C), lambda b: (b, 0, 0)),
        ),
        compiler_params=pltpu.CompilerParams(
            dimension_semantics=("parallel",),
            vmem_limit_bytes=vmem_limit,
        ),
    )(x, gamma3d)


def my_layernorm_ref(x, gamma, beta):
    """Pure-JAX reference matching the PyTorch forward exactly."""
    x = x.astype(jnp.float32)
    mean = jnp.mean(x, axis=-1, keepdims=True)
    var = jnp.mean((x - mean) ** 2, axis=-1, keepdims=True)
    x_hat = (x - mean) / jnp.sqrt(var + _EPS) * gamma + beta
    bias = jnp.mean(x_hat, axis=1, keepdims=True)
    return x_hat - bias


if __name__ == "__main__":
    key = jax.random.PRNGKey(0)
    kx, kg, kb = jax.random.split(key, 3)

    B, L, C = 2, 8, 32  # batch, seq, channels
    x = jax.random.normal(kx, (B, L, C), dtype=jnp.float32)

    # Non-trivial affine params to exercise the gamma path and verify that
    # beta really cancels (matches the PyTorch module for any gamma/beta).
    gamma = 1.0 + 0.1 * jax.random.normal(kg, (C,), dtype=jnp.float32)
    beta = 0.1 * jax.random.normal(kb, (C,), dtype=jnp.float32)

    out = my_layernorm(x, gamma, beta)
    out = jax.block_until_ready(out)

    ref = my_layernorm_ref(x, gamma, beta)
    assert out.shape == (B, L, C)
    assert jnp.allclose(out, ref, atol=1e-4, rtol=1e-4), (
        f"max err {jnp.max(jnp.abs(out - ref))}"
    )

    print("KERNEL_OK")
</pallas_src>

<mosaic_0001>
module attributes {stable_mosaic.version = 11 : i64} {
  func.func @_my_layernorm_kernel(%arg0: i32, %arg1: memref<1x8x32xf32, #tpu.memory_space<vmem>>, %arg2: memref<1x1x32xf32, #tpu.memory_space<vmem>>, %arg3: memref<1x8x32xf32, #tpu.memory_space<vmem>>) attributes {dimension_semantics = [#tpu.dimension_semantics<parallel>], iteration_bounds = array<i64: 2>, scalar_prefetch = 0 : i64, scratch_operands = 0 : i64, tpu.core_type = #tpu.core_type<tc>, window_params = [{transform_indices = @transform_0, window_bounds = array<i64: 1, 8, 32>}, {pipeline_mode = #tpu.pipeline_mode<synchronous>, transform_indices = @transform_1, window_bounds = array<i64: 1, 1, 32>}, {transform_indices = @transform_2, window_bounds = array<i64: 1, 8, 32>}]} {
    %c0 = arith.constant 0 : index
    %c0_0 = arith.constant 0 : index
    %c0_1 = arith.constant 0 : index
    %0 = vector.load %arg1[%c0, %c0_0, %c0_1] : memref<1x8x32xf32, #tpu.memory_space<vmem>>, vector<1x8x32xf32>
    %c0_2 = arith.constant 0 : index
    %c0_3 = arith.constant 0 : index
    %c0_4 = arith.constant 0 : index
    %1 = vector.load %arg2[%c0_2, %c0_3, %c0_4] : memref<1x1x32xf32, #tpu.memory_space<vmem>>, vector<1x1x32xf32>
    %cst = arith.constant dense<0.000000e+00> : vector<1x8xf32>
    %2 = vector.multi_reduction <add>, %0, %cst [2] : vector<1x8x32xf32> to vector<1x8xf32>
    %3 = vector.shape_cast %2 : vector<1x8xf32> to vector<1x8x1xf32>
    %cst_5 = arith.constant 3.200000e+01 : f32
    %4 = vector.broadcast %cst_5 : f32 to vector<1x8x1xf32>
    %5 = arith.divf %3, %4 : vector<1x8x1xf32>
    %6 = vector.broadcast %5 : vector<1x8x1xf32> to vector<1x8x32xf32>
    %7 = arith.subf %0, %6 : vector<1x8x32xf32>
    %8 = arith.mulf %7, %7 : vector<1x8x32xf32>
    %cst_6 = arith.constant dense<0.000000e+00> : vector<1x8xf32>
    %9 = vector.multi_reduction <add>, %8, %cst_6 [2] : vector<1x8x32xf32> to vector<1x8xf32>
    %10 = vector.shape_cast %9 : vector<1x8xf32> to vector<1x8x1xf32>
    %cst_7 = arith.constant 3.200000e+01 : f32
    %11 = vector.broadcast %cst_7 : f32 to vector<1x8x1xf32>
    %12 = arith.divf %10, %11 : vector<1x8x1xf32>
    %cst_8 = arith.constant 9.99999974E-6 : f32
    %13 = vector.broadcast %cst_8 : f32 to vector<1x8x1xf32>
    %14 = arith.addf %12, %13 : vector<1x8x1xf32>
    %15 = math.rsqrt %14 : vector<1x8x1xf32>
    %16 = vector.broadcast %15 : vector<1x8x1xf32> to vector<1x8x32xf32>
    %17 = arith.mulf %7, %16 : vector<1x8x32xf32>
    %cst_9 = arith.constant dense<0.000000e+00> : vector<1x32xf32>
    %18 = vector.multi_reduction <add>, %17, %cst_9 [1] : vector<1x8x32xf32> to vector<1x32xf32>
    %19 = vector.shape_cast %18 : vector<1x32xf32> to vector<1x1x32xf32>
    %cst_10 = arith.constant 8.000000e+00 : f32
    %20 = vector.broadcast %cst_10 : f32 to vector<1x1x32xf32>
    %21 = arith.divf %19, %20 : vector<1x1x32xf32>
    %22 = vector.broadcast %21 : vector<1x1x32xf32> to vector<1x8x32xf32>
    %23 = arith.subf %17, %22 : vector<1x8x32xf32>
    %24 = vector.broadcast %1 : vector<1x1x32xf32> to vector<1x8x32xf32>
    %25 = arith.mulf %23, %24 : vector<1x8x32xf32>
    %c0_11 = arith.constant 0 : index
    %c0_12 = arith.constant 0 : index
    %c0_13 = arith.constant 0 : index
    %26 = vector.load %arg3[%c0_11, %c0_12, %c0_13] : memref<1x8x32xf32, #tpu.memory_space<vmem>>, vector<1x8x32xf32>
    tpu.vector_store %arg3[%c0_11, %c0_12, %c0_13], %25 {strides = array<i32>} : memref<1x8x32xf32, #tpu.memory_space<vmem>>, vector<1x8x32xf32>,
    return
  }
  func.func @transform_0(%arg0: i32) -> (i32, i32, i32) {
    %c0_i32 = arith.constant 0 : i32
    %c0_i32_0 = arith.constant 0 : i32
    %c0_i32_1 = arith.constant 0 : i32
    return %arg0, %c0_i32, %c0_i32_0 : i32, i32, i32
  }
  func.func @transform_1(%arg0: i32) -> (i32, i32, i32) {
    %c0_i32 = arith.constant 0 : i32
    %c0_i32_0 = arith.constant 0 : i32
    %c0_i32_1 = arith.constant 0 : i32
    %c0_i32_2 = arith.constant 0 : i32
    return %c0_i32, %c0_i32_0, %c0_i32_1 : i32, i32, i32
  }
  func.func @transform_2(%arg0: i32) -> (i32, i32, i32) {
    %c0_i32 = arith.constant 0 : i32
    %c0_i32_0 = arith.constant 0 : i32
    %c0_i32_1 = arith.constant 0 : i32
    return %arg0, %c0_i32, %c0_i32_0 : i32, i32, i32
  }
}

</mosaic_0001>

<bundles_post_ra>
// kernel: tpu_custom_call.1
= control target key start
LH: loop header
LB: loop body
LE: loop exit
PB: predicated region body
PF: predicated region fallthrough
CT: control target
= control target key end

     0   :  { %7 = vsyncpa [#allocation3], 0  ;;  %s602_s0 = inlined_call_operand.hbm [shape: f32[2,8,32], index: 0, kind: input, shape index: {}]   ;;  %s603_s1 = inlined_call_operand.vmem [shape: f32[1,1,32], index: 1, kind: input, shape index: {}]   ;;  %s604_s2 = inlined_call_operand.hbm [shape: f32[2,8,32], index: 2, kind: output, shape index: {}]  }
   0x1   :  { %9 = vsyncpa [#allocation3 + $0x1], 0 }
   0x2   :  { %10 = vsyncpa [#allocation4], 0 }
   0x3   :  { %12 = vsyncpa [#allocation4 + $0x1], 0  ;;  %s450_s9 = smov 0   ;;  %s452_s10 = smov 0  }
   0x4   :  { %s454_s11 = smov 0   ;;  %s456_s12 = smov 0  }
   0x5 LB: > { %s471_s13 = sadd.s32 4294967295, %s431_s12   ;;  %s278_s14 = sadd.s32 4294967294, %s431_s12   ;;  %s431_s12 = sphi %s456_s12, %s621_s12   ;;  %s427_s11 = sphi %s454_s11, %s620_s11   ;;  %s423_s10 = sphi %s452_s10, %s619_s10   ;;  %s419_s9 = sphi %s450_s9, %s618_s9  }
   0x6   : > { %s475_s15 = sadd.s32 1, %s431_s12   ;;  %s25_s16 = sadd.s32 1, %s427_s11 }
   0x7   : > { %s22_s17 = ssub.s32 %s431_s12, %s475_s15  ;;  %p32_p0 = scmp.ne.s32.totalorder %s427_s11, %s423_s10 }
   0x8   : > { %p23_p1 = scmp.eq.s32.totalorder %s22_s17, 0  ;;  %p33_p2 = scmp.eq.s32.totalorder %s431_s12, 0 }
   0x9   : > { %p38_p3 = scmp.ne.s32.totalorder %s423_s10, %s419_s9  ;;  %p39_p4 = scmp.eq.s32.totalorder %s471_s13, 0 }
   0xa   : > { %s487_s18 = scalar_select %p23_p1, %s427_s11, %s25_s16  }
   0xb   : > { %p489_p5 = por %p33_p2, %p32_p0  ;;  %p493_p6 = por %p39_p4, %p38_p3 }
   0xc   : > { %p83_p7 = scmp.eq.s32.totalorder %s471_s13, 1  ;;  %p89_p8 = scmp.eq.s32.totalorder %s278_s14, 1 }
   0xd   : > { %s608_s20 = scalar_select %p493_p6, 1, 0 }
   0xe   : > { %p303_p10 = scmp.lt.s32.totalorder %s431_s12, 2  ;;  %p500_p11 = por %p83_p7, %p32_p0 }
   0xf   : > { %p504_p12 = por %p89_p8, %p38_p3  ;;  %s112_s23 = sand.u32 1, %s427_s11  }
  0x10   : > { %s609_s21 = scalar_select %p500_p11, 1, 0 }
  0x11   : > { %s610_s22 = scalar_select %p504_p12, 1, 0 }
  0x12   : > { %s282_s24 = sshll.u32 %s431_s12, 7  ;;  %s281_s25 = sshll.u32 %s112_s23, 3 }
  0x13   : > { %s513_s28 = scalar_lea.hbm %s602_s0, %s282_s24  ;;  %s116_s29 = scalar_lea.vmem [#allocation2], %s281_s25 }
  0x14   : > { %s123_s30 = sshll.u32 %s116_s29, 4  ;;  %p517_p13 = pnand %p303_p10, %p489_p5  ;;  %s521_s30 = int_to_ptr.vmem [resolvable:$true] %s123_s30 }
  0x15   : > { %s113_s4 = scalar_lea.sflag [#allocation3], %s112_s23  ;;  %s339_s5 = scalar_lea.hbm %s513_s28, 128 }
  0x16   : > { %p340_p2 = scmp.ne.s32.totalorder %s513_s28, %s339_s5  ;;  %p341_p3 = pneg %p517_p13 }
  0x17   : > { %s344_s8 = scalar_lea.hbm %s602_s0, 256  ;;  %p345_p5 = scmp.lt.s32.totalorder %s513_s28, %s602_s0 }
  0x18   : > { %p342_p4 = pnand %p341_p3, %p340_p2  ;;  %p346_p8 = scmp.lt.s32.totalorder %s344_s8, %s339_s5 }
  0x1a   : > { %p343_p7 = pneg %p342_p4  ;;  %p347_p10 = por %p346_p8, %p345_p5 }
  0x1c   : > { %p348_p9 = pnand %p347_p10, %p343_p7 }
  0x1e   : > { %351 = shalt.err (!%p348_p9)
}
  0x1f   : > { %s352_s17 = scalar_lea.vmem %s521_s30, 128  ;;  %s433_s19 = smov [#allocation2]  }
  0x20   : > { %p353_p0 = scmp.ne.s32.totalorder %s521_s30, %s352_s17  ;;  %s357_s23 = sshll.u32 %s433_s19, 4  ;;  %s358_s23 = int_to_ptr.vmem [resolvable:$false] %s357_s23 }
  0x21   : > { %s359_s24 = scalar_lea.vmem %s358_s23, 256  ;;  %p360_p4 = scmp.lt.s32.totalorder %s521_s30, %s358_s23 }
  0x22   : > { %p355_p1 = pnand %p353_p0, %p341_p3  ;;  %p361_p12 = scmp.lt.s32.totalorder %s359_s24, %s352_s17 }
  0x24   : > { %p356_p2 = pneg %p355_p1  ;;  %p362_p11 = por %p361_p12, %p360_p4 }
  0x26   : > { %p363_p6 = pnand %p362_p11, %p356_p2 }
  0x28   : > { %366 = shalt.err (!%p363_p6)
}
  0x29   : > { %298 = dma.hbm_to_vmem [thread:$0]  (!%p517_p13), %s513_s28, 128, %s521_s30, %s113_s4  }
  0x2a   : > { %p612_p9 = scmp.lt.s32.totalorder %s431_s12, 3  ;;  %p613_p7 = scmp.ge.s32.totalorder %s431_s12, 1 }
  0x2c   : > { %p129_p0 = pnand %p613_p7, %p612_p9 }
  0x2d   : > { %s548_s25 = sand.u32 (!%p129_p0), 1, %s423_s10   ;;  %p614_p6 = scmp.ne.s32.totalorder (!%p129_p0), %s608_s20, 0 }
  0x2e   : > { %132 = sbr.rel (%p129_p0) target bundleno = 389 (0x185), region = 28  ;;  %s284_s26 = sshll.u32 (!%p129_p0), %s548_s25, 3 }
  0x2f   : > { %s135_s27 = scalar_lea.sflag (!%p129_p0), [#allocation3], %s548_s25  ;;  %s138_s29 = scalar_lea.vmem (!%p129_p0), [#allocation2], %s284_s26 }
  0x33   : > { %410 = dma.done.wait (%p614_p6), %s135_s27, 128  }
  0x34   : > { %412 = vsyncadd (%p614_p6), %s135_s27, 4294967168  ;;  %vm161_vm0 = vcmask 261120   ;;  %v159_v0 = vld [vmem:[%s138_s29] sm:$0xff]  ;;  %s288_s30 = sshll.u32 %s471_s13, 7  ;;  %s158_s3 = scalar_lea.vmem [#allocation5], %s284_s26 }
  0x35   : > { %v162_v1 = vsel %vm161_vm0, %v159_v0, 0.0  ;;  %v286_v20 = vld [vmem:[%s603_s1] ss:$0 sm:$0xff]  ;;  %s208_s4 = sshll.u32 %s158_s3, 4  ;;  %s206_s7 = scalar_lea.hbm %s604_s2, %s288_s30  ;;  %s209_s4 = int_to_ptr.vmem [resolvable:$true] %s208_s4 }
  0x36   : > { %163 = vadd.xlane.f32.xlu0 %v162_v1  ;;  %s195_s8 = scalar_lea.sflag [#allocation4], %s548_s25  ;;  %s367_s14 = scalar_lea.vmem %s209_s4, 128 }
  0x37   : > { %p368_p11 = scmp.ne.s32.totalorder %s209_s4, %s367_s14  ;;  %p615_p12 = scmp.ne.s32.totalorder %s609_s21, 0 }
  0x38   : > { %s434_s16 = smov [#allocation5]  }
  0x39   : > { %p369_p13 = pnand %p368_p11, %p615_p12  ;;  %s371_s13 = sshll.u32 %s434_s16, 4  ;;  %s372_s13 = int_to_ptr.vmem [resolvable:$false] %s371_s13 }
  0x3a   : > { %s373_s17 = scalar_lea.vmem %s372_s13, 256  ;;  %p374_p3 = scmp.lt.s32.totalorder %s209_s4, %s372_s13 }
  0x3b   : > { %p370_p1 = pneg %p369_p13  ;;  %p375_p5 = scmp.lt.s32.totalorder %s373_s17, %s367_s14 }
  0x3d   : > { %p376_p8 = por %p375_p5, %p374_p3 }
  0x3f   : > { %p377_p10 = pnand %p376_p8, %p370_p1 }
  0xbf   : > { %v164_v2 = vpop.xlane.xlu0 %163 }
  0xc0   : > { %v166_v3 = vmul.f32 0.03125, %v164_v2 }
  0xc2   : > { %v167_v4 = vsub.f32 %v159_v0, %v166_v3 }
  0xc4   : > { %v168_v5 = vmul.f32 %v167_v4, %v167_v4 }
  0xc6   : > { %v169_v6 = vsel %vm161_vm0, %v168_v5, 0.0 }
  0xc7   : > { %170 = vadd.xlane.f32.xlu0 %v169_v6 }
 0x150   : > { %v171_v7 = vpop.xlane.xlu0 %170 }
 0x151   : > { %v172_v8 = vmul.f32 0.03125, %v171_v7 }
 0x153   : > { %v173_v9 = vadd.f32 1e-05, %v172_v8 }
 0x155   : > { %337 = vrsqrt.f32 %v173_v9 }
 0x162   : > { %v338_v10 = vpop.eup %337 }
 0x163   : > { %v175_v11 = vmul.f32 %v338_v10, %v167_v4 }
 0x165   : > { %v176_v12 = vsel %vm161_vm0, %v175_v11, 0.0 }
 0x166   : > { %v177_v13 = vrot.slane %v176_v12, 4 }
 0x168   : > { %v178_v14 = vadd.f32 %v177_v13, %v176_v12 }
 0x16a   : > { %v179_v15 = vrot.slane %v178_v14, 2 }
 0x16c   : > { %v180_v16 = vadd.f32 %v179_v15, %v178_v14 }
 0x16e   : > { %v181_v17 = vrot.slane %v180_v16, 1 }
 0x170   : > { %v182_v18 = vadd.f32 %v181_v17, %v180_v16 }
 0x172   : > { %v184_v19 = vmul.f32 0.125, %v182_v18 }
 0x174   : > { %v185_v21 = vsub.f32 %v175_v11, %v184_v19 }
 0x176   : > { %v192_v22 = vmul.f32 %v286_v20, %v185_v21 }
 0x178   : > { %193 = vst.msk [vmem:[%s158_s3] sm:$0xff] %vm161_vm0, %v192_v22 }
 0x179   : > { %380 = shalt.err (!%p377_p10)
}
 0x17a   : > { %s381_s19 = scalar_lea.hbm %s206_s7, 128  ;;  %s385_s25 = scalar_lea.hbm %s604_s2, 256 }
 0x17b   : > { %p382_p2 = scmp.ne.s32.totalorder %s206_s7, %s381_s19  ;;  %p386_p7 = scmp.lt.s32.totalorder %s206_s7, %s604_s2 }
 0x17c   : > { %p387_p0 = scmp.lt.s32.totalorder %s385_s25, %s381_s19 }
 0x17d   : > { %p383_p4 = pnand %p382_p2, %p615_p12 }
 0x17e   : > { %p388_p6 = por %p387_p0, %p386_p7 }
 0x17f   : > { %p384_p9 = pneg %p383_p4 }
 0x181   : > { %p389_p11 = pnand %p388_p6, %p384_p9 }
 0x183   : > { %392 = shalt.err (!%p389_p11)
}
 0x184   : > { %293 = dma.vmem_to_hbm [thread:$0]  (%p615_p12), %s209_s4, 128, %s206_s7, %s195_s8  }
 0x185 PF: > { %s220_s29 = sand.u32 1, %s419_s9   ;;  %p616_p13 = scmp.ne.s32.totalorder %s610_s22, 0 }
 0x186   : > { %p617_p1 = scmp.ge.s32.totalorder %s431_s12, 2  ;;  %s221_s20 = scalar_lea.sflag [#allocation4], %s220_s29 }
 0x188   : > { %p300_p3 = pnand %p617_p1, %p616_p13 }
 0x18a   : > { %p301_p5 = pneg %p300_p3 }
 0x18c   : > { %414 = dma.done.wait (%p301_p5), %s221_s20, 128  }
 0x18d   : > { %416 = vsyncadd (%p301_p5), %s221_s20, 4294967168  ;;  %p15_p8 = scmp.ge.s32.totalorder %s475_s15, 4   ;;  %s618_s9 = smov %s423_s10 }
 0x18e   : > { %s619_s10 = smov %s427_s11  ;;  %s620_s11 = smov %s487_s18 }
 0x18f   : > { %s621_s12 = smov %s475_s15  ;;  %17 = sbr.rel (!%p15_p8) target bundleno = 5 (0x5), region = 73 }
 0x194   :  { %226 = vsyncpa [#allocation3], 1 }
 0x195   :  { %228 = vsyncpa [#allocation3 + $0x1], 1 }
 0x196   :  { %229 = vsyncpa [#allocation4], 1 }
 0x197   :  { %231 = vsyncpa [#allocation4 + $0x1], 1 }

</bundles_post_ra>
